<compile_context>
chip_gen: v6e
topology: v6e:2x2x1
jax: 0.10.0
libtpu: 0.0.40
codegen_flags: <defaults>
</compile_context>

<pallas_src>
import functools
import math

import jax
import jax.numpy as jnp
from jax.experimental import pallas as pl
from jax.experimental.pallas import tpu as pltpu


_INV_SQRT2 = 0.7071067811865476


def _gelu_exact(h):
    # Exact (erf-based) GELU, matching torch.nn.GELU() default.
    return 0.5 * h * (1.0 + jax.lax.erf(h * _INV_SQRT2))


def _ffn_kernel_single(x_ref, w1_ref, b1_ref, w2_ref, b2_ref, o_ref, *, compute_dtype):
    """Whole hidden dim in one step: no accumulator, output written directly."""
    h = jnp.dot(x_ref[...].astype(compute_dtype), w1_ref[...].astype(compute_dtype),
                preferred_element_type=jnp.float32)
    h = _gelu_exact(h + b1_ref[...].astype(jnp.float32))
    # TODO(synk): training-mode dropout (p>0) would go here via pltpu.prng_*;
    # the module default p=0.0 (and eval mode) makes both Dropouts identities.
    o = jnp.dot(h.astype(compute_dtype), w2_ref[...].astype(compute_dtype),
                preferred_element_type=jnp.float32)
    o_ref[...] = (o + b2_ref[...].astype(jnp.float32)).astype(o_ref.dtype)


def _ffn_kernel_multi(x_ref, w1_ref, b1_ref, w2_ref, b2_ref, o_ref, acc_ref, *, compute_dtype):
    """Hidden dim split across grid axis 1 (reduction of the second matmul)."""
    j = pl.program_id(1)

    @pl.when(j == 0)
    def _():
        acc_ref[...] = jnp.zeros_like(acc_ref)

    h = jnp.dot(x_ref[...].astype(compute_dtype), w1_ref[...].astype(compute_dtype),
                preferred_element_type=jnp.float32)
    h = _gelu_exact(h + b1_ref[...].astype(jnp.float32))
    # TODO(synk): training-mode dropout (p>0) would go here via pltpu.prng_*.
    acc_ref[...] += jnp.dot(h.astype(compute_dtype), w2_ref[...].astype(compute_dtype),
                            preferred_element_type=jnp.float32)

    @pl.when(j == pl.num_programs(1) - 1)
    def _():
        o_ref[...] = (acc_ref[...] + b2_ref[...].astype(jnp.float32)).astype(o_ref.dtype)


def _round_up(n, m):
    return ((n + m - 1) // m) * m


def _vmem_budget_and_cap():
    """Generation-aware (budget, vmem_limit cap) in bytes."""
    cap = None
    try:
        cap = getattr(pltpu.get_tpu_info(), "vmem_capacity_bytes", None)
    except Exception:
        cap = None
    if cap is None:
        cap = 64 * 1024 * 1024            # conservative: assume v7x (64 MiB / TC)
    if cap <= 64 * 1024 * 1024:            # v7x: leave headroom for compiler scratch
        return 40 * 1024 * 1024, 52 * 1024 * 1024
    return 96 * 1024 * 1024, 100 * 1024 * 1024   # v5e / v6e: 128 MiB physical VMEM


def pallas_feedforward(x, w1, b1, w2, b2, *, block_rows=None, block_hidden=None,
                       compute_dtype=None, vmem_budget_bytes=None):
    """FeedForward.forward: GELU(x @ W1 + b1) @ W2 + b2 (dropout p=0)."""
    orig_shape = x.shape
    dim = orig_shape[-1]
    hidden = w1.shape[1]
    assert w1.shape == (dim, hidden) and w2.shape == (hidden, dim)
    assert b1.shape[-1] == hidden and b2.shape[-1] == dim

    rows = math.prod(orig_shape[:-1]) if len(orig_shape) > 1 else 1
    x2 = x.reshape(rows, dim)
    b1_2 = b1.reshape(1, hidden)
    b2_2 = b2.reshape(1, dim)

    if compute_dtype is None:
        compute_dtype = x.dtype            # preserve module numerics by default
    compute_dtype = jnp.dtype(compute_dtype)

    budget, limit_cap = _vmem_budget_and_cap()
    if vmem_budget_bytes is not None:
        budget = int(vmem_budget_bytes)

    # Minimum sublane tile per dtype (f32: 8 rows, bf16: 16, int8/fp8: 32).
    align = {4: 8, 2: 16, 1: 32}.get(jnp.dtype(x.dtype).itemsize, 8)

    def tile_bytes(tm, bh, with_acc):
        b = 0
        b += 2 * tm * dim * x2.dtype.itemsize            # x tile (double-buffered)
        b += 2 * dim * bh * w1.dtype.itemsize            # w1 tile
        b += 2 * bh * dim * w2.dtype.itemsize            # w2 tile
        b += 2 * (bh * b1.dtype.itemsize + dim * b2.dtype.itemsize)
        b += 2 * tm * dim * x2.dtype.itemsize            # out tile
        b += tm * bh * (4 + compute_dtype.itemsize)      # hidden-activation temporaries
        if with_acc:
            b += tm * dim * 4                            # f32 accumulator scratch
        return b

    # --- hidden tiling: keep the whole hidden dim resident unless it can't fit ---
    if block_hidden is None:
        cands = [hidden] + [c for c in (4096, 2048, 1024, 512, 256, 128)
                            if c < hidden and hidden % c == 0]
        tm_probe = max(align, min(512, _round_up(rows, align)))
        chosen = None
        for c in cands:                                   # largest that fits (prefer full hidden)
            if tile_bytes(tm_probe, c, c != hidden) <= budget:
                chosen = c
                break
        if chosen is None:
            for c in cands:
                if tile_bytes(align, c, c != hidden) <= budget:
                    chosen = c
                    break
        block_hidden = chosen if chosen is not None else cands[-1]

    if block_hidden != hidden:
        if hidden % block_hidden != 0:
            raise ValueError("block_hidden must divide hidden_dim")
        if block_hidden % 128 != 0:
            raise ValueError("block_hidden must be a multiple of 128 (lane width)")
    multi = block_hidden != hidden

    # --- row tiling: as large as the VMEM budget allows ---
    if block_rows is None:
        block_rows = 2048
    block_rows = min(block_rows, _round_up(rows, align))
    # Keep >=2 row tiles whenever rows permit so the "parallel" row axis can be
    # split across both TensorCores on v7x (harmless on single-TC v5e/v6e).
    if rows > align:
        block_rows = min(block_rows, _round_up(pl.cdiv(rows, 2), align))
    block_rows = max(align, (block_rows // align) * align)
    while tile_bytes(block_rows, block_hidden, multi) > budget and block_rows > align:
        block_rows = max(align, ((block_rows // 2) // align) * align)

    vmem_limit = int(min(limit_cap,
                         max(32 * 1024 * 1024,
                             tile_bytes(block_rows, block_hidden, multi) + (4 << 20))))

    row_tiles = pl.cdiv(rows, block_rows)   # ragged edge handled by Pallas (no host pad)
    out_shape = jax.ShapeDtypeStruct((rows, dim), x.dtype)

    if not multi:
        # Weights/biases have constant index_maps -> DMA'd from HBM exactly once.
        kernel = functools.partial(_ffn_kernel_single, compute_dtype=compute_dtype)
        grid = (row_tiles,)
        in_specs = [
            pl.BlockSpec((block_rows, dim), lambda i: (i, 0)),   # x (streamed)
            pl.BlockSpec((dim, hidden), lambda i: (0, 0)),       # w1 (resident)
            pl.BlockSpec((1, hidden), lambda i: (0, 0)),         # b1
            pl.BlockSpec((hidden, dim), lambda i: (0, 0)),       # w2 (resident)
            pl.BlockSpec((1, dim), lambda i: (0, 0)),            # b2
        ]
        out_specs = pl.BlockSpec((block_rows, dim), lambda i: (i, 0))
        scratch = []
        dim_sem = ("parallel",)
    else:
        # Hidden is the reduction axis of the 2nd matmul -> "arbitrary" + acc scratch.
        # (If profiling shows exposed weight DMA here, pipeline_mode=pl.Buffered(3)
        #  on the w1/w2 specs hides it at the cost of one extra buffer each.)
        kernel = functools.partial(_ffn_kernel_multi, compute_dtype=compute_dtype)
        grid = (row_tiles, hidden // block_hidden)
        in_specs = [
            pl.BlockSpec((block_rows, dim), lambda i, j: (i, 0)),
            pl.BlockSpec((dim, block_hidden), lambda i, j: (0, j)),
            pl.BlockSpec((1, block_hidden), lambda i, j: (0, j)),
            pl.BlockSpec((block_hidden, dim), lambda i, j: (j, 0)),
            pl.BlockSpec((1, dim), lambda i, j: (0, 0)),
        ]
        out_specs = pl.BlockSpec((block_rows, dim), lambda i, j: (i, 0))
        scratch = [pltpu.VMEM((block_rows, dim), jnp.float32)]
        dim_sem = ("parallel", "arbitrary")

    out = pl.pallas_call(
        kernel,
        out_shape=out_shape,
        grid_spec=pltpu.PrefetchScalarGridSpec(
            num_scalar_prefetch=0,
            grid=grid,
            in_specs=in_specs,
            out_specs=out_specs,
            scratch_shapes=scratch,
        ),
        compiler_params=pltpu.CompilerParams(
            dimension_semantics=dim_sem,
            vmem_limit_bytes=vmem_limit,
        ),
    )(x2, w1, b1_2, w2, b2_2)

    return out.reshape(orig_shape)


if __name__ == "__main__":
    key = jax.random.PRNGKey(0)
    k_x, k_w1, k_b1, k_w2, k_b2 = jax.random.split(key, 5)

    # Small but lane-dense shapes (last dims multiples of 128).
    batch, seq, dim, hidden_dim = 2, 8, 128, 256
    x = jax.random.normal(k_x, (batch, seq, dim), dtype=jnp.float32)

    # nn.Linear-style params stored as (in, out) so the kernel computes x @ W.
    w1 = jax.random.normal(k_w1, (dim, hidden_dim), dtype=jnp.float32) / jnp.sqrt(dim)
    b1 = 0.1 * jax.random.normal(k_b1, (hidden_dim,), dtype=jnp.float32)
    w2 = jax.random.normal(k_w2, (hidden_dim, dim), dtype=jnp.float32) / jnp.sqrt(hidden_dim)
    b2 = 0.1 * jax.random.normal(k_b2, (dim,), dtype=jnp.float32)

    # Pure-JAX reference: FFN with exact (erf) GELU, dropout p=0 -> identity.
    h_ref = x @ w1 + b1
    h_ref = 0.5 * h_ref * (1.0 + jax.lax.erf(h_ref * _INV_SQRT2))
    ref = h_ref @ w2 + b2

    # 1) Default path: resident weights, single hidden step, f32 (torch parity).
    out = jax.block_until_ready(pallas_feedforward(x, w1, b1, w2, b2))
    assert jnp.allclose(out, ref, atol=2e-3, rtol=2e-3), "mismatch (default path)"

    # 2) Forced hidden split: exercises the accumulator / reduction kernel.
    out2 = jax.block_until_ready(
        pallas_feedforward(x, w1, b1, w2, b2, block_hidden=128))
    assert jnp.allclose(out2, ref, atol=2e-3, rtol=2e-3), "mismatch (split-hidden path)"

    # 3) bf16 MXU operands with f32 accumulation (fast path at real FFN sizes).
    out3 = jax.block_until_ready(
        pallas_feedforward(x, w1, b1, w2, b2, compute_dtype=jnp.bfloat16))
    assert jnp.allclose(out3, ref, atol=5e-2, rtol=5e-2), "mismatch (bf16 compute)"

    print("KERNEL_OK")
</pallas_src>

<mosaic_0001>
module attributes {stable_mosaic.version = 11 : i64} {
  func.func @_ffn_kernel_single(%arg0: i32, %arg1: memref<8x128xf32, #tpu.memory_space<vmem>>, %arg2: memref<128x256xf32, #tpu.memory_space<vmem>>, %arg3: memref<1x256xf32, #tpu.memory_space<vmem>>, %arg4: memref<256x128xf32, #tpu.memory_space<vmem>>, %arg5: memref<1x128xf32, #tpu.memory_space<vmem>>, %arg6: memref<8x128xf32, #tpu.memory_space<vmem>>) attributes {dimension_semantics = [#tpu.dimension_semantics<parallel>], iteration_bounds = array<i64: 2>, scalar_prefetch = 0 : i64, scratch_operands = 0 : i64, tpu.core_type = #tpu.core_type<tc>, window_params = [{transform_indices = @transform_0, window_bounds = array<i64: 8, 128>}, {pipeline_mode = #tpu.pipeline_mode<synchronous>, transform_indices = @transform_1, window_bounds = array<i64: 128, 256>}, {pipeline_mode = #tpu.pipeline_mode<synchronous>, transform_indices = @transform_2, window_bounds = array<i64: 1, 256>}, {pipeline_mode = #tpu.pipeline_mode<synchronous>, transform_indices = @transform_3, window_bounds = array<i64: 256, 128>}, {pipeline_mode = #tpu.pipeline_mode<synchronous>, transform_indices = @transform_4, window_bounds = array<i64: 1, 128>}, {transform_indices = @transform_5, window_bounds = array<i64: 8, 128>}]} {
    %c0 = arith.constant 0 : index
    %c0_0 = arith.constant 0 : index
    %0 = vector.load %arg1[%c0, %c0_0] : memref<8x128xf32, #tpu.memory_space<vmem>>, vector<8x128xf32>
    %c0_1 = arith.constant 0 : index
    %c0_2 = arith.constant 0 : index
    %1 = vector.load %arg2[%c0_1, %c0_2] : memref<128x256xf32, #tpu.memory_space<vmem>>, vector<128x256xf32>
    %cst = arith.constant dense<0.000000e+00> : vector<8x256xf32>
    %2 = tpu.matmul %0, %1, %cst {dimension_numbers = #tpu.dot_dimension_numbers<[1], [0], [0], [1], [0, 0, 1, 1], [], []>} : vector<8x128xf32>, vector<128x256xf32>, vector<8x256xf32> -> vector<8x256xf32>
    %c0_3 = arith.constant 0 : index
    %c0_4 = arith.constant 0 : index
    %3 = vector.load %arg3[%c0_3, %c0_4] : memref<1x256xf32, #tpu.memory_space<vmem>>, vector<1x256xf32>
    %4 = vector.broadcast %3 : vector<1x256xf32> to vector<8x256xf32>
    %5 = arith.addf %2, %4 : vector<8x256xf32>
    %cst_5 = arith.constant 5.000000e-01 : f32
    %6 = vector.broadcast %cst_5 : f32 to vector<8x256xf32>
    %7 = arith.mulf %6, %5 : vector<8x256xf32>
    %cst_6 = arith.constant 0.707106769 : f32
    %8 = vector.broadcast %cst_6 : f32 to vector<8x256xf32>
    %9 = arith.mulf %5, %8 : vector<8x256xf32>
    %10 = math.erf %9 : vector<8x256xf32>
    %cst_7 = arith.constant 1.000000e+00 : f32
    %11 = vector.broadcast %cst_7 : f32 to vector<8x256xf32>
    %12 = arith.addf %11, %10 : vector<8x256xf32>
    %13 = arith.mulf %7, %12 : vector<8x256xf32>
    %c0_8 = arith.constant 0 : index
    %c0_9 = arith.constant 0 : index
    %14 = vector.load %arg4[%c0_8, %c0_9] : memref<256x128xf32, #tpu.memory_space<vmem>>, vector<256x128xf32>
    %cst_10 = arith.constant dense<0.000000e+00> : vector<8x128xf32>
    %15 = tpu.matmul %13, %14, %cst_10 {dimension_numbers = #tpu.dot_dimension_numbers<[1], [0], [0], [1], [0, 0, 1, 1], [], []>} : vector<8x256xf32>, vector<256x128xf32>, vector<8x128xf32> -> vector<8x128xf32>
    %c0_11 = arith.constant 0 : index
    %c0_12 = arith.constant 0 : index
    %16 = vector.load %arg5[%c0_11, %c0_12] : memref<1x128xf32, #tpu.memory_space<vmem>>, vector<1x128xf32>
    %17 = vector.broadcast %16 : vector<1x128xf32> to vector<8x128xf32>
    %18 = arith.addf %15, %17 : vector<8x128xf32>
    %c0_13 = arith.constant 0 : index
    %c0_14 = arith.constant 0 : index
    %19 = vector.load %arg6[%c0_13, %c0_14] : memref<8x128xf32, #tpu.memory_space<vmem>>, vector<8x128xf32>
    tpu.vector_store %arg6[%c0_13, %c0_14], %18 {strides = array<i32>} : memref<8x128xf32, #tpu.memory_space<vmem>>, vector<8x128xf32>,
    return
  }
  func.func @transform_0(%arg0: i32) -> (i32, i32) {
    %c0_i32 = arith.constant 0 : i32
    %c0_i32_0 = arith.constant 0 : i32
    return %arg0, %c0_i32 : i32, i32
  }
  func.func @transform_1(%arg0: i32) -> (i32, i32) {
    %c0_i32 = arith.constant 0 : i32
    %c0_i32_0 = arith.constant 0 : i32
    %c0_i32_1 = arith.constant 0 : i32
    return %c0_i32, %c0_i32_0 : i32, i32
  }
  func.func @transform_2(%arg0: i32) -> (i32, i32) {
    %c0_i32 = arith.constant 0 : i32
    %c0_i32_0 = arith.constant 0 : i32
    %c0_i32_1 = arith.constant 0 : i32
    return %c0_i32, %c0_i32_0 : i32, i32
  }
  func.func @transform_3(%arg0: i32) -> (i32, i32) {
    %c0_i32 = arith.constant 0 : i32
    %c0_i32_0 = arith.constant 0 : i32
    %c0_i32_1 = arith.constant 0 : i32
    return %c0_i32, %c0_i32_0 : i32, i32
  }
  func.func @transform_4(%arg0: i32) -> (i32, i32) {
    %c0_i32 = arith.constant 0 : i32
    %c0_i32_0 = arith.constant 0 : i32
    %c0_i32_1 = arith.constant 0 : i32
    return %c0_i32, %c0_i32_0 : i32, i32
  }
  func.func @transform_5(%arg0: i32) -> (i32, i32) {
    %c0_i32 = arith.constant 0 : i32
    %c0_i32_0 = arith.constant 0 : i32
    return %arg0, %c0_i32 : i32, i32
  }
}

</mosaic_0001>

<bundles_post_ra>
// kernel: tpu_custom_call.1
= control target key start
LH: loop header
LB: loop body
LE: loop exit
PB: predicated region body
PF: predicated region fallthrough
CT: control target
= control target key end

     0   :  { %10 = vsyncpa [#allocation3], 0  ;;  %s1103_s0 = inlined_call_operand.hbm [shape: f32[16,128], index: 0, kind: input, shape index: {}]   ;;  %s1104_s1 = inlined_call_operand.hbm [shape: f32[128,256], index: 1, kind: input, shape index: {}]   ;;  %s1105_s2 = inlined_call_operand.vmem [shape: f32[1,256], index: 2, kind: input, shape index: {}]   ;;  %s1106_s3 = inlined_call_operand.hbm [shape: f32[256,128], index: 3, kind: input, shape index: {}]   ;;  %s1107_s4 = inlined_call_operand.vmem [shape: f32[1,128], index: 4, kind: input, shape index: {}]   ;;  %s1108_s5 = inlined_call_operand.hbm [shape: f32[16,128], index: 5, kind: output, shape index: {}]  }
   0x1   :  { %12 = vsyncpa [#allocation3 + $0x1], 0 }
   0x2   :  { %13 = vsyncpa [#allocation6], 0 }
   0x3   :  { %14 = vsyncpa [#allocation4], 0 }
   0x4   :  { %16 = vsyncpa [#allocation4 + $0x1], 0  ;;  %s925_s18 = smov 0   ;;  %s927_s19 = smov 0  }
   0x5   :  { %s929_s20 = smov 0   ;;  %s931_s21 = smov 0  }
   0x6 LB: > { %s946_s22 = sadd.s32 4294967295, %s884_s21   ;;  %s608_s23 = sadd.s32 4294967294, %s884_s21   ;;  %s884_s21 = sphi %s931_s21, %s1130_s21   ;;  %s880_s20 = sphi %s929_s20, %s1129_s20   ;;  %s876_s19 = sphi %s927_s19, %s1128_s19   ;;  %s872_s18 = sphi %s925_s18, %s1127_s18  }
   0x7   : > { %p42_p0 = scmp.ne.s32.totalorder %s876_s19, %s872_s18  ;;  %p1109_p1 = scmp.eq.s32.totalorder %s946_s22, 0 }
   0x8   : > { %p156_p3 = scmp.eq.s32.totalorder %s608_s23, 1  ;;  %p609_p5 = scmp.ge.s32.totalorder %s884_s21, 1 }
   0x9   : > { %p955_p4 = por %p1109_p1, %p42_p0  ;;  %p163_p7 = scmp.lt.s32.totalorder %s884_s21, 3 }
   0xa   : > { %p960_p6 = por %p156_p3, %p42_p0  ;;  %s886_s27 = smov [#allocation5]  }
   0xb   : > { %s1113_s24 = scalar_select %p955_p4, 1, 0 }
   0xc   : > { %s1114_s25 = scalar_select %p960_p6, 1, 0 }
   0xd   : > { %p965_p8 = pnand %p609_p5, %p163_p7  ;;  %s175_s28 = sshll.u32 %s886_s27, 4  ;;  %s176_s28 = int_to_ptr.vmem [resolvable:$true] %s175_s28 }
   0xe   : > { %s887_s30 = smov [#allocation7]   ;;  %s747_s7 = scalar_lea.vmem %s176_s28, 4096 }
   0xf   : > { %s1115_s26 = scalar_select %p965_p8, 1, 0 }
  0x10   : > { %p672_p9 = pneg %p965_p8  ;;  %s191_s6 = sshll.u32 %s887_s30, 4  ;;  %s192_s6 = int_to_ptr.vmem [resolvable:$true] %s191_s6 }
  0x11   : > { %p748_p13 = scmp.ne.s32.totalorder %s176_s28, %s747_s7  ;;  %p755_p5 = scmp.lt.s32.totalorder %s176_s28, %s176_s28 }
  0x12   : > { %p974_p11 = pnand %p672_p9, %p1109_p1  ;;  %p756_p7 = scmp.lt.s32.totalorder %s747_s7, %s747_s7 }
  0x14   : > { %p738_p12 = pneg %p974_p11  ;;  %p757_p10 = por %p756_p7, %p755_p5 }
  0x16   : > { %p750_p0 = pnand %p748_p13, %p738_p12 }
  0x18   : > { %p751_p3 = pneg %p750_p0 }
  0x1a   : > { %p758_p9 = pnand %p757_p10, %p751_p3 }
  0x1c   : > { %761 = shalt.err (!%p758_p9)
}
  0x1d   : > { %s888_s8 = smov 256   ;;  %s889_s9 = smov 16  }
  0x1e   : > { %675 = dma.hbm_to_vmem [thread:$0]  (!%p974_p11), %s1104_s1, 4096, %s176_s28, [#allocation6], %s888_s8, %s888_s8, %s889_s9  }
  0x1f   : > { %s773_s12 = scalar_lea.vmem %s192_s6, 4096  ;;  %p781_p2 = scmp.lt.s32.totalorder %s192_s6, %s192_s6 }
  0x20   : > { %p774_p1 = scmp.ne.s32.totalorder %s192_s6, %s773_s12  ;;  %p782_p6 = scmp.lt.s32.totalorder %s773_s12, %s773_s12 }
  0x22   : > { %p776_p13 = pnand %p774_p1, %p738_p12  ;;  %p783_p5 = por %p782_p6, %p781_p2 }
  0x24   : > { %p777_p0 = pneg %p776_p13 }
  0x26   : > { %p784_p10 = pnand %p783_p5, %p777_p0 }
  0x28   : > { %787 = shalt.err (!%p784_p10)
}
  0x29   : > { %s890_s13 = smov 128   ;;  %s891_s14 = smov 8  }
  0x2a   : > { %678 = dma.hbm_to_vmem [thread:$0]  (!%p974_p11), %s1106_s3, 4096, %s192_s6, [#allocation6], %s890_s13, %s890_s13, %s891_s14  }
  0x2b   : > { %s997_s17 = sadd.s32 1, %s884_s21   ;;  %s29_s27 = sadd.s32 1, %s880_s20 }
  0x2c   : > { %s26_s23 = ssub.s32 %s884_s21, %s997_s17  ;;  %p36_p2 = scmp.ne.s32.totalorder %s880_s20, %s876_s19 }
  0x2d   : > { %p27_p1 = scmp.eq.s32.totalorder %s26_s23, 0  ;;  %p37_p6 = scmp.eq.s32.totalorder %s884_s21, 0 }
  0x2e   : > { %p1117_p3 = scmp.eq.s32.totalorder %s946_s22, 1  ;;  %p689_p9 = scmp.lt.s32.totalorder %s884_s21, 2 }
  0x2f   : > { %s1006_s28 = scalar_select %p27_p1, %s880_s20, %s29_s27  }
  0x30   : > { %p38_p12 = por %p37_p6, %p36_p2  ;;  %p1010_p7 = por %p1117_p3, %p36_p2 }
  0x31   : > { %s208_s29 = sand.u32 1, %s880_s20   ;;  %s614_s6 = sshll.u32 %s884_s21, 7 }
  0x32   : > { %s1118_s30 = scalar_select %p1010_p7, 1, 0 }
  0x33   : > { %s613_s7 = sshll.u32 %s208_s29, 3  ;;  %s1020_s10 = scalar_lea.hbm %s1103_s0, %s614_s6 }
  0x34   : > { %s212_s11 = scalar_lea.vmem [#allocation2], %s613_s7  ;;  %p1022_p11 = pnand %p689_p9, %p38_p12 }
  0x35   : > { %s219_s12 = sshll.u32 %s212_s11, 4  ;;  %s209_s14 = scalar_lea.sflag [#allocation3], %s208_s29  ;;  %s220_s12 = int_to_ptr.vmem [resolvable:$true] %s219_s12 }
  0x36   : > { %s788_s15 = scalar_lea.hbm %s1020_s10, 128  ;;  %p790_p0 = pneg %p1022_p11 }
  0x37   : > { %p789_p13 = scmp.ne.s32.totalorder %s1020_s10, %s788_s15  ;;  %s793_s27 = scalar_lea.hbm %s1103_s0, 256 }
  0x38   : > { %p794_p1 = scmp.lt.s32.totalorder %s1020_s10, %s1103_s0  ;;  %p795_p2 = scmp.lt.s32.totalorder %s793_s27, %s788_s15 }
  0x39   : > { %p791_p5 = pnand %p790_p0, %p789_p13 }
  0x3a   : > { %p796_p6 = por %p795_p2, %p794_p1 }
  0x3b   : > { %p792_p10 = pneg %p791_p5 }
  0x3d   : > { %p797_p12 = pnand %p796_p6, %p792_p10 }
  0x3f   : > { %800 = shalt.err (!%p797_p12)
}
  0x40   : > { %s801_s8 = scalar_lea.vmem %s220_s12, 128  ;;  %s892_s29 = smov [#allocation2]  }
  0x41   : > { %p802_p3 = scmp.ne.s32.totalorder %s220_s12, %s801_s8  ;;  %s806_s9 = sshll.u32 %s892_s29, 4  ;;  %s807_s9 = int_to_ptr.vmem [resolvable:$false] %s806_s9 }
  0x42   : > { %s808_s11 = scalar_lea.vmem %s807_s9, 256  ;;  %p809_p13 = scmp.lt.s32.totalorder %s220_s12, %s807_s9 }
  0x43   : > { %p804_p9 = pnand %p802_p3, %p790_p0  ;;  %p810_p5 = scmp.lt.s32.totalorder %s808_s11, %s801_s8 }
  0x45   : > { %p805_p7 = pneg %p804_p9  ;;  %p811_p4 = por %p810_p5, %p809_p13 }
  0x47   : > { %p812_p8 = pnand %p811_p4, %p805_p7 }
  0x49   : > { %815 = shalt.err (!%p812_p8)
}
  0x4a   : > { %682 = dma.hbm_to_vmem [thread:$0]  (!%p1022_p11), %s1020_s10, 128, %s220_s12, %s209_s14  }
  0x4b   : > { %p1120_p10 = scmp.ne.s32.totalorder %s1115_s26, 0 }
  0x4c   : > { %s1043_s15 = sand.u32 (!%p1120_p10), 1, %s876_s19   ;;  %p1121_p4 = scmp.ne.s32.totalorder (!%p1120_p10), %s1113_s24, 0 }
  0x4d   : > { %228 = sbr.rel (%p1120_p10) target bundleno = 549 (0x225), region = 40  ;;  %s616_s16 = sshll.u32 (!%p1120_p10), %s1043_s15, 3 }
  0x4e   : > { %s231_s23 = scalar_lea.sflag (!%p1120_p10), [#allocation3], %s1043_s15  ;;  %s1049_s27 = scalar_lea.vmem (!%p1120_p10), [#allocation2], %s616_s16 }
  0x52   : > { %859 = dma.done.wait (%p1121_p4), %s231_s23, 128  }
  0x53   : > { %861 = vsyncadd (%p1121_p4), %s231_s23, 4294967168  ;;  %p1122_p8 = scmp.eq.s32.totalorder %s946_s22, 0 }
  0x55   : > { %863 = dma.done.wait (%p1122_p8), [#allocation6], 8192   ;;  %p1123_p7 = pmov %p1122_p8 }
  0x56   : > { %v893_v0 = vmov 0.0   ;;  %v301_v1 = vld [vmem:[#allocation5 + $0xf8] sm:$0xff]  ;;  %v300_v2 = vld [vmem:[#allocation5 + $0xf0] sm:$0xff]  ;;  %v299_v3 = vld [vmem:[#allocation5 + $0xe8] sm:$0xff]  ;;  %s622_s13 = sshll.u32 %s946_s22, 7  ;;  %s268_s14 = scalar_lea.vmem [#allocation8], %s616_s16 }
  0x57   : > { %865 = vsyncadd (%p1123_p7), [#allocation6], 4294959104  ;;  %378 = vmatprep.mubr.f32.mxu0 %v893_v0  ;;  %314 = vmatprep.subr.mxu0 %v301_v1  ;;  %v298_v4 = vld [vmem:[#allocation5 + $0xe0] sm:$0xff]  ;;  %v297_v5 = vld [vmem:[#allocation5 + $0xd8] sm:$0xff]  ;;  %s519_s6 = sshll.u32 %s268_s14, 4  ;;  %s517_s29 = scalar_lea.hbm %s1108_s5, %s622_s13  ;;  %s520_s6 = int_to_ptr.vmem [resolvable:$true] %s519_s6 }
  0x58   : > { %315 = vmatpush1.msra.mxu0 %v300_v2  ;;  %v296_v6 = vld [vmem:[#allocation5 + $0xd0] sm:$0xff]  ;;  %v295_v7 = vld [vmem:[#allocation5 + $0xc8] sm:$0xff]  ;;  %v294_v8 = vld [vmem:[#allocation5 + $0xc0] sm:$0xff]  ;;  %v304_v2 = vlaneseq  ;;  %s506_s9 = scalar_lea.sflag [#allocation4], %s1043_s15  ;;  %s816_s11 = scalar_lea.vmem %s520_s6, 128 }
  0x59   : > { %316 = vmatprep.subr.mxu0 %v299_v3  ;;  %v293_v9 = vld [vmem:[#allocation5 + $0xb8] sm:$0xff]  ;;  %v292_v10 = vld [vmem:[#allocation5 + $0xb0] sm:$0xff]  ;;  %v291_v11 = vld [vmem:[#allocation5 + $0xa8] sm:$0xff]  ;;  %p817_p11 = scmp.ne.s32.totalorder %s520_s6, %s816_s11  ;;  %p1124_p0 = scmp.ne.s32.totalorder %s1118_s30, 0 }
  0x5a   : > { %317 = vmatpush1.msra.mxu0 %v298_v4  ;;  %v290_v12 = vld [vmem:[#allocation5 + $0xa0] sm:$0xff]  ;;  %v289_v13 = vld [vmem:[#allocation5 + $0x98] sm:$0xff]  ;;  %v288_v14 = vld [vmem:[#allocation5 + $0x90] sm:$0xff]  ;;  %v305_v3 = vshrl.u32 %v304_v2, 7  ;;  %s894_s23 = smov [#allocation8]  }
  0x5b   : > { %318 = vmatprep.subr.mxu0 %v297_v5  ;;  %v426_v15 = vld [vmem:[#allocation7 + $0xf8] sm:$0xff]  ;;  %v425_v17 = vld [vmem:[#allocation7 + $0xf0] sm:$0xff]  ;;  %v287_v18 = vld [vmem:[#allocation5 + $0x88] sm:$0xff]  ;;  %p818_p1 = pnand %p817_p11, %p1124_p0 }
  0x5c   : > { %319 = vmatpush1.msra.mxu0 %v296_v6  ;;  %v410_v16 = vld [vmem:[#allocation7 + $0x78] sm:$0xff]  ;;  %625 = vmatprep.subr.mxu1 %v426_v15  ;;  %v409_v19 = vld [vmem:[#allocation7 + $0x70] sm:$0xff]  ;;  %v286_v20 = vld [vmem:[#allocation5 + $0x80] sm:$0xff]  ;;  %v306_v4 = vsub.s32 0, %v305_v3  ;;  %v310_v6 = vsub.s32 1, %v305_v3 }
  0x5d   : > { %320 = vmatprep.subr.mxu0 %v295_v7  ;;  %626 = vmatpush3.msra.mxu1 %v410_v16  ;;  %v424_v21 = vld [vmem:[#allocation7 + $0xe8] sm:$0xff]  ;;  %v285_v22 = vld [vmem:[#allocation5 + $0x78] sm:$0xff]  ;;  %v284_v24 = vld [vmem:[#allocation5 + $0x70] sm:$0xff]  ;;  %p819_p2 = pneg %p818_p1 }
  0x5e   : > { %321 = vmatpush1.msra.mxu0 %v294_v8  ;;  %627 = vmatprep.subr.mxu1 %v425_v17  ;;  %v408_v23 = vld [vmem:[#allocation7 + $0x68] sm:$0xff]  ;;  %v282_v26 = vld [vmem:[#allocation5 + $0x60] sm:$0xff]  ;;  %v281_v27 = vld [vmem:[#allocation5 + $0x58] sm:$0xff] }
  0x5f   : > { %322 = vmatprep.subr.mxu0 %v293_v9  ;;  %628 = vmatpush3.msra.mxu1 %v409_v19  ;;  %v283_v25 = vld [vmem:[#allocation5 + $0x68] sm:$0xff]  ;;  %v280_v28 = vld [vmem:[#allocation5 + $0x50] sm:$0xff]  ;;  %v278_v30 = vld [vmem:[#allocation5 + $0x40] sm:$0xff] }
  0x60   : > { %323 = vmatpush1.msra.mxu0 %v292_v10  ;;  %629 = vmatprep.subr.mxu1 %v424_v21  ;;  %v279_v29 = vld [vmem:[#allocation5 + $0x48] sm:$0xff]  ;;  %v277_v31 = vld [vmem:[#allocation5 + $0x38] sm:$0xff]  ;;  %v276_v32 = vld [vmem:[#allocation5 + $0x30] sm:$0xff] }
  0x61   : > { %324 = vmatprep.subr.mxu0 %v291_v11  ;;  %630 = vmatpush3.msra.mxu1 %v408_v23  ;;  %v275_v33 = vld [vmem:[#allocation5 + $0x28] sm:$0xff]  ;;  %v274_v34 = vld [vmem:[#allocation5 + $0x20] sm:$0xff]  ;;  %v273_v35 = vld [vmem:[#allocation5 + $0x18] sm:$0xff] }
  0x62   : > { %325 = vmatpush1.msra.mxu0 %v290_v12  ;;  %v272_v36 = vld [vmem:[#allocation5 + $0x10] sm:$0xff]  ;;  %v271_v37 = vld [vmem:[#allocation5 + $0x8] sm:$0xff]  ;;  %v270_v38 = vld [vmem:[#allocation5] sm:$0xff] }
  0x63   : > { %326 = vmatprep.subr.mxu0 %v289_v13  ;;  %v269_v39 = vld [vmem:[%s1049_s27] sm:$0xff]  ;;  %v423_v40 = vld [vmem:[#allocation7 + $0xe0] sm:$0xff]  ;;  %v420_v46 = vld [vmem:[#allocation7 + $0xc8] sm:$0xff]  ;;  %s820_s27 = sshll.u32 %s894_s23, 4  ;;  %s821_s27 = int_to_ptr.vmem [resolvable:$false] %s820_s27 }
  0x64   : > { %327 = vmatpush1.msra.mxu0 %v288_v14  ;;  %631 = vmatprep.subr.mxu1 %v423_v40  ;;  %v407_v41 = vld [vmem:[#allocation7 + $0x60] sm:$0xff]  ;;  %v422_v42 = vld [vmem:[#allocation7 + $0xd8] sm:$0xff]  ;;  %v421_v44 = vld [vmem:[#allocation7 + $0xd0] sm:$0xff]  ;;  %s822_s22 = scalar_lea.vmem %s821_s27, 256  ;;  %p823_p6 = scmp.lt.s32.totalorder %s520_s6, %s821_s27 }
  0x65   : > { %328 = vmatprep.subr.mxu0 %v287_v18  ;;  %632 = vmatpush3.msra.mxu1 %v407_v41  ;;  %v406_v43 = vld [vmem:[#allocation7 + $0x58] sm:$0xff]  ;;  %v405_v45 = vld [vmem:[#allocation7 + $0x50] sm:$0xff]  ;;  %v404_v47 = vld [vmem:[#allocation7 + $0x48] sm:$0xff]  ;;  %p824_p12 = scmp.lt.s32.totalorder %s822_s22, %s816_s11 }
  0x66   : > { %329 = vmatpush1.msra.mxu0 %v286_v20  ;;  %633 = vmatprep.subr.mxu1 %v422_v42  ;;  %v419_v48 = vld [vmem:[#allocation7 + $0xc0] sm:$0xff]  ;;  %v418_v50 = vld [vmem:[#allocation7 + $0xb8] sm:$0xff]  ;;  %v417_v52 = vld [vmem:[#allocation7 + $0xb0] sm:$0xff] }
  0x67   : > { %330 = vmatprep.subr.mxu0 %v285_v22  ;;  %634 = vmatpush3.msra.mxu1 %v406_v43  ;;  %v403_v49 = vld [vmem:[#allocation7 + $0x40] sm:$0xff]  ;;  %v402_v51 = vld [vmem:[#allocation7 + $0x38] sm:$0xff]  ;;  %v401_v53 = vld [vmem:[#allocation7 + $0x30] sm:$0xff]  ;;  %p825_p3 = por %p824_p12, %p823_p6 }
  0x68   : > { %331 = vmatpush1.msra.mxu0 %v284_v24  ;;  %635 = vmatprep.subr.mxu1 %v421_v44  ;;  %v416_v54 = vld [vmem:[#allocation7 + $0xa8] sm:$0xff]  ;;  %v415_v56 = vld [vmem:[#allocation7 + $0xa0] sm:$0xff]  ;;  %v414_v58 = vld [vmem:[#allocation7 + $0x98] sm:$0xff] }
  0x69   : > { %332 = vmatprep.subr.mxu0 %v283_v25  ;;  %636 = vmatpush3.msra.mxu1 %v405_v45  ;;  %v400_v55 = vld [vmem:[#allocation7 + $0x28] sm:$0xff]  ;;  %v399_v57 = vld [vmem:[#allocation7 + $0x20] sm:$0xff]  ;;  %v398_v59 = vld [vmem:[#allocation7 + $0x18] sm:$0xff]  ;;  %p826_p9 = pnand %p825_p3, %p819_p2 }
  0x6a   : > { %333 = vmatpush1.msra.mxu0 %v282_v26  ;;  %637 = vmatprep.subr.mxu1 %v420_v46  ;;  %v413_v60 = vld [vmem:[#allocation7 + $0x90] sm:$0xff]  ;;  %v412_v62 = vld [vmem:[#allocation7 + $0x88] sm:$0xff]  ;;  %v411_v0 = vld [vmem:[#allocation7 + $0x80] sm:$0xff] }
  0x6b   : > { %334 = vmatprep.subr.mxu0 %v281_v27  ;;  %638 = vmatpush3.msra.mxu1 %v404_v47  ;;  %v397_v61 = vld [vmem:[#allocation7 + $0x10] sm:$0xff]  ;;  %v396_v63 = vld [vmem:[#allocation7 + $0x8] sm:$0xff]  ;;  %v395_v1 = vld [vmem:[#allocation7] sm:$0xff] }
  0x6c   : > { %335 = vmatpush1.msra.mxu0 %v280_v28  ;;  %639 = vmatprep.subr.mxu1 %v419_v48  ;;  %v302_v5 = vld [vmem:[%s1105_s2] sm:$0x3] }
  0x6d   : > { %336 = vmatprep.subr.mxu0 %v279_v29  ;;  %640 = vmatpush3.msra.mxu1 %v403_v49  ;;  %v307_v7 = vrot.slane %v302_v5, %v306_v4  ;;  %v311_v8 = vrot.slane %v302_v5, %v310_v6  ;;  %v620_v24 = vld [vmem:[%s1107_s4] ss:$0 sm:$0xff] }
  0x6e   : > { %337 = vmatpush1.msra.mxu0 %v278_v30  ;;  %641 = vmatprep.subr.mxu1 %v418_v50 }
  0x6f   : > { %338 = vmatprep.subr.mxu0 %v277_v31  ;;  %642 = vmatpush3.msra.mxu1 %v402_v51 }
  0x70   : > { %339 = vmatpush1.msra.mxu0 %v276_v32  ;;  %643 = vmatprep.subr.mxu1 %v417_v52 }
  0x71   : > { %340 = vmatprep.subr.mxu0 %v275_v33  ;;  %644 = vmatpush3.msra.mxu1 %v401_v53 }
  0x72   : > { %341 = vmatpush1.msra.mxu0 %v274_v34  ;;  %645 = vmatprep.subr.mxu1 %v416_v54 }
  0x73   : > { %342 = vmatprep.subr.mxu0 %v273_v35  ;;  %646 = vmatpush3.msra.mxu1 %v400_v55 }
  0x74   : > { %343 = vmatpush1.msra.mxu0 %v272_v36  ;;  %647 = vmatprep.subr.mxu1 %v415_v56 }
  0x75   : > { %344 = vmatprep.subr.mxu0 %v271_v37  ;;  %648 = vmatpush3.msra.mxu1 %v399_v57 }
  0x76   : > { %345 = vmatpush1.msra.mxu0 %v270_v38  ;;  %649 = vmatprep.subr.mxu1 %v414_v58 }
  0x77   : > { %379 = vmatmul.mubr.f32.vlgmr.msra.gmra.mxu0 %v269_v39  ;;  %650 = vmatpush3.msra.mxu1 %v398_v59 }
  0x78   : > { %651 = vmatprep.subr.mxu1 %v413_v60 }
  0x79   : > { %652 = vmatpush3.msra.mxu1 %v397_v61 }
  0x7a   : > { %653 = vmatprep.subr.mxu1 %v412_v62 }
  0x7b   : > { %654 = vmatpush3.msra.mxu1 %v396_v63 }
  0x7c   : > { %655 = vmatprep.subr.mxu1 %v411_v0 }
  0x7d   : > { %656 = vmatpush3.msra.mxu1 %v395_v1 }
 0x137   : > { %v380_v9 = vpop.f32.mrf.mxu0 }
 0x138   : > { %v381_v10 = vadd.f32 %v380_v9, %v307_v7 }
 0x139   : > { %v382_v11 = vpop.f32.mrf.mxu0 }
 0x13a   : > { %v387_v12 = vmul.f32 0.70710677, %v381_v10  ;;  %v383_v13 = vadd.f32 %v382_v11, %v311_v8  ;;  %v385_v20 = vmul.f32 0.5, %v381_v10 }
 0x13c   : > { %732 = verf.f32 %v387_v12  ;;  %v388_v14 = vmul.f32 0.70710677, %v383_v13  ;;  %v386_v18 = vmul.f32 0.5, %v383_v13 }
 0x13e   : > { %734 = verf.f32 %v388_v14 }
 0x149   : > { %v733_v15 = vpop.eup %732 }
 0x14a   : > { %v391_v17 = vadd.f32 1.0, %v733_v15 }
 0x14b   : > { %v735_v16 = vpop.eup %734 }
 0x14c   : > { %v392_v19 = vadd.f32 1.0, %v735_v16  ;;  %v393_v22 = vmul.f32 %v391_v17, %v385_v20 }
 0x14e   : > { %v394_v21 = vmul.f32 %v392_v19, %v386_v18 }
 0x150   : > { %498 = vmatprep.mubr.f32.mxu1 %v394_v21 }
 0x151   : > { %499 = vmatmul.mubr.f32.vlgmr.msra.gmra.mxu1 %v393_v22 }
 0x211   : > { %v657_v23 = vpop.f32.mrf.mxu1 }
 0x213   : > { %v658_v25 = vpop.f32.mrf.mxu1 }
 0x214   : > { %v659_v26 = vadd.f32 %v658_v25, %v657_v23 }
 0x216   : > { %v501_v27 = vadd.f32 %v659_v26, %v620_v24 }
 0x218   : > { %504 = vst [vmem:[%s268_s14] sm:$0xff] %v501_v27 }
 0x219   : > { %829 = shalt.err (!%p826_p9)
}
 0x21a   : > { %s830_s16 = scalar_lea.hbm %s517_s29, 128  ;;  %s834_s26 = scalar_lea.hbm %s1108_s5, 256 }
 0x21b   : > { %p831_p13 = scmp.ne.s32.totalorder %s517_s29, %s830_s16  ;;  %p835_p4 = scmp.lt.s32.totalorder %s517_s29, %s1108_s5 }
 0x21c   : > { %p836_p8 = scmp.lt.s32.totalorder %s834_s26, %s830_s16 }
 0x21d   : > { %p832_p5 = pnand %p831_p13, %p1124_p0 }
 0x21e   : > { %p837_p7 = por %p836_p8, %p835_p4 }
 0x21f   : > { %p833_p10 = pneg %p832_p5 }
 0x221   : > { %p838_p11 = pnand %p837_p7, %p833_p10 }
 0x223   : > { %841 = shalt.err (!%p838_p11)
}
 0x224   : > { %670 = dma.vmem_to_hbm [thread:$0]  (%p1124_p0), %s520_s6, 128, %s517_s29, %s506_s9  }
 0x225 PF: > { %s531_s13 = sand.u32 1, %s872_s18   ;;  %p1125_p1 = scmp.ne.s32.totalorder %s1114_s25, 0 }
 0x226   : > { %p1126_p2 = scmp.ge.s32.totalorder %s884_s21, 2  ;;  %s532_s14 = scalar_lea.sflag [#allocation4], %s531_s13 }
 0x228   : > { %p684_p6 = pnand %p1126_p2, %p1125_p1 }
 0x22a   : > { %p685_p12 = pneg %p684_p6 }
 0x22c   : > { %867 = dma.done.wait (%p685_p12), %s532_s14, 128  }
 0x22d   : > { %869 = vsyncadd (%p685_p12), %s532_s14, 4294967168  ;;  %p19_p3 = scmp.ge.s32.totalorder %s997_s17, 4   ;;  %s1127_s18 = smov %s876_s19 }
 0x22e   : > { %s1128_s19 = smov %s880_s20  ;;  %s1129_s20 = smov %s1006_s28 }
 0x22f   : > { %s1130_s21 = smov %s997_s17  ;;  %21 = sbr.rel (!%p19_p3) target bundleno = 6 (0x6), region = 93 }
 0x234   :  { %537 = vsyncpa [#allocation3], 1 }
 0x235   :  { %539 = vsyncpa [#allocation3 + $0x1], 1 }
 0x236   :  { %540 = vsyncpa [#allocation6], 1 }
 0x237   :  { %541 = vsyncpa [#allocation4], 1 }
 0x238   :  { %543 = vsyncpa [#allocation4 + $0x1], 1 }

</bundles_post_ra>
